<compile_context>
chip_gen: v5e
topology: v5e:2x2
jax: 0.10.0
libtpu: 0.0.40
codegen_flags: <defaults>
</compile_context>

<pallas_src>
import functools

import jax
import jax.numpy as jnp
from jax.experimental import pallas as pl
from jax.experimental.pallas import tpu as pltpu


def _round_up(x, m):
    return (x + m - 1) // m * m


# ---------------------------------------------------------------------------
# Fused Pallas kernel: conv3x3 (as one K=128 matmul) + bias + PReLU
#                      + global-avg-pool accumulation + FC + L2 norm
# ---------------------------------------------------------------------------

def _fused_face_kernel(x_ref, w_ref, b_ref, a_ref, fcw_ref, fcb_ref, o_ref,
                       pool_acc, *, n_valid_rows, n_total_rows):
    """Grid = (batch_tiles, m_chunks);  m is the innermost ("arbitrary") axis.

    x_ref  : (B_TILE, M_TILE, K_p)   im2col patches, bf16 (K_p = 128)
    w_ref  : (K_p, Cout_p)           packed conv weights, bf16
    b_ref  : (1, Cout_p)             conv bias, f32
    a_ref  : (1, Cout_p)             PReLU slope, f32
    fcw_ref: (Cout_p, E_p)           embedding weight, f32
    fcb_ref: (1, E_p)                embedding bias, f32
    o_ref  : (B_TILE, E_p)           unit-norm embeddings, f32
    pool_acc: VMEM (B_TILE, Cout_p)  per-image running sum of PReLU(conv), f32
    """
    m_idx = pl.program_id(1)
    bt = x_ref.shape[0]

    @pl.when(m_idx == 0)
    def _init():
        pool_acc[...] = jnp.zeros_like(pool_acc)

    w = w_ref[...]        # hoisted loads (reused across the static batch loop)
    bias = b_ref[...]
    alpha = a_ref[...]

    # One big lane-dense K=128 MXU matmul per image in the tile; f32 accum.
    for b in range(bt):   # static unroll, bt <= 8
        acc = jnp.dot(x_ref[b], w, preferred_element_type=jnp.float32)  # (M_TILE, Cout_p)
        y = acc + bias
        y = jnp.where(y >= 0.0, y, alpha * y)                           # per-channel PReLU
        s = jnp.sum(y, axis=0, keepdims=True)                           # XLU sublane reduce
        pool_acc[pl.ds(b, 1), :] = pool_acc[pl.ds(b, 1), :] + s

    @pl.when(m_idx == pl.num_programs(1) - 1)
    def _finalize():
        # Zero-padded patch rows (hw..hw_p) contribute exactly PReLU(bias)
        # each; subtract them once instead of masking per position.
        pad_val = jnp.where(bias >= 0.0, bias, alpha * bias)            # (1, Cout_p)
        n_pad = float(n_total_rows - n_valid_rows)
        pooled = (pool_acc[...] - n_pad * pad_val) * (1.0 / float(n_valid_rows))
        emb = jnp.dot(pooled, fcw_ref[...],
                      preferred_element_type=jnp.float32) + fcb_ref[...]
        inv = jax.lax.rsqrt(jnp.sum(emb * emb, axis=-1, keepdims=True) + 1e-12)
        o_ref[...] = (emb * inv).astype(o_ref.dtype)


# ---------------------------------------------------------------------------
# Wrapper: im2col, lane-dense zero-padding, pallas_call
# ---------------------------------------------------------------------------

def inference_model_forward(x_nchw, params, *, b_tile=None, m_tile=2048):
    """InferenceModel.forward(x) == backbone(x, label=None) -> (N, E) embeddings."""
    n, cin, h, w = x_nchw.shape
    cout = params["conv_w"].shape[0]
    emb_dim = params["fc_w"].shape[0]

    hw = h * w
    k = 9 * cin
    k_p = _round_up(k, 128)          # packed contraction dim (9 taps * Cin)
    cout_p = _round_up(cout, 128)    # lane-dense conv channels
    emb_p = _round_up(emb_dim, 128)  # lane-dense embedding

    # Batch blocking: amortize grid-step overhead, but keep >=2 batch tiles
    # when possible so the "parallel" axis can feed both TCs on v7x.
    if b_tile is None:
        b_tile = max(1, min(8, n // 2))
    b_tile = max(1, min(int(b_tile), n))
    n_p = _round_up(n, b_tile)
    num_bt = n_p // b_tile

    # Row (M) tiling: bounds live f32 intermediates to (m_tile, 128).
    m_tile = min(_round_up(int(m_tile), 8), _round_up(hw, 8))
    hw_p = _round_up(hw, m_tile)
    num_mt = hw_p // m_tile

    # ---- im2col in the wrapper (layout plumbing; never round-trips a 9x ----
    # ---- expanded matrix through the kernel's compute path per tap) --------
    x_nhwc = jnp.transpose(x_nchw, (0, 2, 3, 1)).astype(jnp.float32)
    xp = jnp.pad(x_nhwc, ((0, 0), (1, 1), (1, 1), (0, 0)))
    taps = [xp[:, dh:dh + h, dw:dw + w, :] for dh in range(3) for dw in range(3)]
    patches = jnp.concatenate(taps, axis=-1).reshape(n, hw, k)
    patches = jnp.pad(patches, ((0, n_p - n), (0, hw_p - hw), (0, k_p - k)))
    patches = patches.astype(jnp.bfloat16)

    # ---- parameters: packed / zero-padded to lane-dense shapes -------------
    # PyTorch conv weight (Cout, Cin, 3, 3) -> (9*Cin, Cout) matching the
    # patch column order (tap-major, channel-minor), then pad to (K_p, Cout_p).
    w_mat = jnp.transpose(params["conv_w"], (2, 3, 1, 0)).reshape(k, cout)
    w_mat = jnp.pad(w_mat, ((0, k_p - k), (0, cout_p - cout))).astype(jnp.bfloat16)

    conv_b = jnp.pad(params["conv_b"], (0, cout_p - cout)).reshape(1, cout_p).astype(jnp.float32)
    alpha = jnp.pad(params["prelu_alpha"], (0, cout_p - cout)).reshape(1, cout_p).astype(jnp.float32)

    # Padded rows/cols of fc_w and padded entries of fc_b are exactly zero, so
    # padded embedding lanes are zero and the L2 norm is unaffected.
    fc_w = jnp.pad(jnp.transpose(params["fc_w"]),
                   ((0, cout_p - cout), (0, emb_p - emb_dim))).astype(jnp.float32)
    fc_b = jnp.pad(params["fc_b"], (0, emb_p - emb_dim)).reshape(1, emb_p).astype(jnp.float32)

    # ---- right-size the VMEM budget (don't request the full 64 MiB of v7x) -
    in_block = b_tile * m_tile * k_p * 2                 # bf16 patch block
    inter = m_tile * cout_p * 4                          # live f32 activation
    weights_b = k_p * cout_p * 2 + cout_p * emb_p * 4 + 3 * cout_p * 4 + emb_p * 4
    est = 2 * in_block + 4 * inter + 2 * weights_b + (2 << 20)
    vmem_limit = int(min(64 * 1024 * 1024, max(16 * 1024 * 1024, 2 * est)))

    kernel = functools.partial(_fused_face_kernel,
                               n_valid_rows=hw, n_total_rows=hw_p)

    out = pl.pallas_call(
        kernel,
        out_shape=jax.ShapeDtypeStruct((num_bt, b_tile, emb_p), jnp.float32),
        grid=(num_bt, num_mt),
        in_specs=[
            pl.BlockSpec((b_tile, m_tile, k_p), lambda b, m: (b, m, 0)),  # patches
            pl.BlockSpec((k_p, cout_p), lambda b, m: (0, 0)),             # conv W
            pl.BlockSpec((1, cout_p), lambda b, m: (0, 0)),               # conv b
            pl.BlockSpec((1, cout_p), lambda b, m: (0, 0)),               # PReLU a
            pl.BlockSpec((cout_p, emb_p), lambda b, m: (0, 0)),           # fc W
            pl.BlockSpec((1, emb_p), lambda b, m: (0, 0)),                # fc b
        ],
        out_specs=pl.BlockSpec((None, b_tile, emb_p), lambda b, m: (b, 0, 0)),
        scratch_shapes=[pltpu.VMEM((b_tile, cout_p), jnp.float32)],
        compiler_params=pltpu.CompilerParams(
            dimension_semantics=("parallel", "arbitrary"),  # batch across TCs
            vmem_limit_bytes=vmem_limit,
        ),
    )(patches, w_mat, conv_b, alpha, fc_w, fc_b)

    return out.reshape(n_p, emb_p)[:n, :emb_dim]


# ---------------------------------------------------------------------------
# Pure-JAX reference (f32) for correctness checking
# ---------------------------------------------------------------------------

def _reference_forward(x_nchw, params):
    n, cin, h, w = x_nchw.shape
    cout = params["conv_w"].shape[0]
    x = jnp.transpose(x_nchw, (0, 2, 3, 1))
    xp = jnp.pad(x, ((0, 0), (1, 1), (1, 1), (0, 0)))
    cols = [xp[:, dh:dh + h, dw:dw + w, :] for dh in range(3) for dw in range(3)]
    patches = jnp.concatenate(cols, axis=-1).reshape(n * h * w, 9 * cin)
    w_mat = jnp.transpose(params["conv_w"], (2, 3, 1, 0)).reshape(9 * cin, cout)
    y = patches @ w_mat + params["conv_b"]
    y = jnp.where(y >= 0.0, y, params["prelu_alpha"] * y)
    pooled = y.reshape(n, h * w, cout).mean(axis=1)
    emb = pooled @ params["fc_w"].T + params["fc_b"]
    return emb / jnp.linalg.norm(emb, axis=-1, keepdims=True)


# ---------------------------------------------------------------------------
# Deterministic parameter init + demo
# ---------------------------------------------------------------------------

def init_params(key, cin=4, cout=8, emb_dim=32):
    k1, k2, k3, k4 = jax.random.split(key, 4)
    return {
        "conv_w": 0.1 * jax.random.normal(k1, (cout, cin, 3, 3), jnp.float32),
        "conv_b": 0.01 * jax.random.normal(k2, (cout,), jnp.float32),
        "prelu_alpha": jnp.full((cout,), 0.25, jnp.float32),
        "fc_w": 0.1 * jax.random.normal(k3, (emb_dim, cout), jnp.float32),
        "fc_b": 0.01 * jax.random.normal(k4, (emb_dim,), jnp.float32),
    }


if __name__ == "__main__":
    key = jax.random.PRNGKey(0)
    kx, kp = jax.random.split(key)

    # Small shapes consistent with the module's NCHW image input
    # (config INPUT_SIZE is 112x112x3; 16x16x4 here for a fast synthetic run).
    batch, cin, hw = 2, 4, 16
    x = jax.random.normal(kx, (batch, cin, hw, hw), jnp.float32)
    params = init_params(kp, cin=cin, cout=8, emb_dim=32)

    # m_tile=96 forces multiple row chunks + zero-padded-row correction, so the
    # accumulator / finalize path of the kernel is exercised even at toy sizes.
    fwd = jax.jit(lambda xx: inference_model_forward(xx, params, m_tile=96))
    out = fwd(x)
    jax.block_until_ready(out)

    assert out.shape == (batch, 32)
    # embeddings are L2-normalized
    norms = jnp.linalg.norm(out, axis=-1)
    assert bool(jnp.all(jnp.abs(norms - 1.0) < 1e-3)), norms
    # matches the f32 reference within bf16 tolerance
    ref = _reference_forward(x, params)
    max_err = float(jnp.max(jnp.abs(out - ref)))
    assert max_err < 3e-2, f"max |out - ref| = {max_err}"

    print("KERNEL_OK")
</pallas_src>

<mosaic_0001>
module attributes {stable_mosaic.version = 11 : i64} {
  func.func @_fused_face_kernel(%arg0: i32, %arg1: i32, %arg2: memref<1x96x128xbf16, #tpu.memory_space<vmem>>, %arg3: memref<128x128xbf16, #tpu.memory_space<vmem>>, %arg4: memref<1x128xf32, #tpu.memory_space<vmem>>, %arg5: memref<1x128xf32, #tpu.memory_space<vmem>>, %arg6: memref<128x128xf32, #tpu.memory_space<vmem>>, %arg7: memref<1x128xf32, #tpu.memory_space<vmem>>, %arg8: memref<1x1x128xf32, #tpu.memory_space<vmem>>, %arg9: memref<1x128xf32, #tpu.memory_space<vmem>>) attributes {dimension_semantics = [#tpu.dimension_semantics<parallel>, #tpu.dimension_semantics<arbitrary>], iteration_bounds = array<i64: 2, 3>, scalar_prefetch = 0 : i64, scratch_operands = 1 : i64, tpu.core_type = #tpu.core_type<tc>, window_params = [{transform_indices = @transform_0, window_bounds = array<i64: 1, 96, 128>}, {pipeline_mode = #tpu.pipeline_mode<synchronous>, transform_indices = @transform_1, window_bounds = array<i64: 128, 128>}, {pipeline_mode = #tpu.pipeline_mode<synchronous>, transform_indices = @transform_2, window_bounds = array<i64: 1, 128>}, {pipeline_mode = #tpu.pipeline_mode<synchronous>, transform_indices = @transform_3, window_bounds = array<i64: 1, 128>}, {pipeline_mode = #tpu.pipeline_mode<synchronous>, transform_indices = @transform_4, window_bounds = array<i64: 128, 128>}, {pipeline_mode = #tpu.pipeline_mode<synchronous>, transform_indices = @transform_5, window_bounds = array<i64: 1, 128>}, {transform_indices = @transform_6, window_bounds = array<i64: 1, 1, 128>}]} {
    %c0_i32 = arith.constant 0 : i32
    %0 = arith.cmpi eq, %arg1, %c0_i32 : i32
    %1 = arith.extui %0 : i1 to i32
    %c0_i32_0 = arith.constant 0 : i32
    %2 = arith.cmpi ne, %1, %c0_i32_0 : i32
    scf.if %2 {
      %cst_16 = arith.constant 0.000000e+00 : f32
      %24 = vector.broadcast %cst_16 : f32 to vector<1x128xf32>
      %c0_17 = arith.constant 0 : index
      %c0_18 = arith.constant 0 : index
      %25 = vector.load %arg9[%c0_17, %c0_18] : memref<1x128xf32, #tpu.memory_space<vmem>>, vector<1x128xf32>
      tpu.vector_store %arg9[%c0_17, %c0_18], %24 {strides = array<i32>} : memref<1x128xf32, #tpu.memory_space<vmem>>, vector<1x128xf32>,
    } else {
    }
    %c0 = arith.constant 0 : index
    %c0_1 = arith.constant 0 : index
    %3 = vector.load %arg3[%c0, %c0_1] : memref<128x128xbf16, #tpu.memory_space<vmem>>, vector<128x128xbf16>
    %c0_2 = arith.constant 0 : index
    %c0_3 = arith.constant 0 : index
    %4 = vector.load %arg4[%c0_2, %c0_3] : memref<1x128xf32, #tpu.memory_space<vmem>>, vector<1x128xf32>
    %c0_4 = arith.constant 0 : index
    %c0_5 = arith.constant 0 : index
    %5 = vector.load %arg5[%c0_4, %c0_5] : memref<1x128xf32, #tpu.memory_space<vmem>>, vector<1x128xf32>
    %c0_6 = arith.constant 0 : index
    %c0_7 = arith.constant 0 : index
    %c0_8 = arith.constant 0 : index
    %6 = vector.load %arg2[%c0_6, %c0_7, %c0_8] : memref<1x96x128xbf16, #tpu.memory_space<vmem>>, vector<1x96x128xbf16>
    %7 = vector.shape_cast %6 : vector<1x96x128xbf16> to vector<96x128xbf16>
    %cst = arith.constant dense<0.000000e+00> : vector<96x128xf32>
    %8 = tpu.matmul %7, %3, %cst {dimension_numbers = #tpu.dot_dimension_numbers<[1], [0], [0], [1], [0, 0, 1, 1], [], []>} : vector<96x128xbf16>, vector<128x128xbf16>, vector<96x128xf32> -> vector<96x128xf32>
    %9 = vector.broadcast %4 : vector<1x128xf32> to vector<96x128xf32>
    %10 = arith.addf %8, %9 : vector<96x128xf32>
    %cst_9 = arith.constant 0.000000e+00 : f32
    %11 = vector.broadcast %cst_9 : f32 to vector<96x128xf32>
    %12 = arith.cmpf oge, %10, %11 : vector<96x128xf32>
    %13 = vector.broadcast %5 : vector<1x128xf32> to vector<96x128xf32>
    %14 = arith.mulf %13, %10 : vector<96x128xf32>
    %15 = arith.select %12, %10, %14 : vector<96x128xi1>, vector<96x128xf32>
    %cst_10 = arith.constant dense<0.000000e+00> : vector<128xf32>
    %16 = vector.multi_reduction <add>, %15, %cst_10 [0] : vector<96x128xf32> to vector<128xf32>
    %17 = vector.shape_cast %16 : vector<128xf32> to vector<1x128xf32>
    %c0_11 = arith.constant 0 : index
    %c0_12 = arith.constant 0 : index
    %18 = vector.load %arg9[%c0_11, %c0_12] : memref<1x128xf32, #tpu.memory_space<vmem>>, vector<1x128xf32>
    %19 = arith.addf %18, %17 : vector<1x128xf32>
    %c0_13 = arith.constant 0 : index
    %c0_14 = arith.constant 0 : index
    %20 = vector.load %arg9[%c0_13, %c0_14] : memref<1x128xf32, #tpu.memory_space<vmem>>, vector<1x128xf32>
    tpu.vector_store %arg9[%c0_13, %c0_14], %19 {strides = array<i32>} : memref<1x128xf32, #tpu.memory_space<vmem>>, vector<1x128xf32>,
    %c2_i32 = arith.constant 2 : i32
    %21 = arith.cmpi eq, %arg1, %c2_i32 : i32
    %22 = arith.extui %21 : i1 to i32
    %c0_i32_15 = arith.constant 0 : i32
    %23 = arith.cmpi ne, %22, %c0_i32_15 : i32
    scf.if %23 {
      %cst_16 = arith.constant 0.000000e+00 : f32
      %24 = vector.broadcast %cst_16 : f32 to vector<1x128xf32>
      %25 = arith.cmpf oge, %4, %24 : vector<1x128xf32>
      %26 = arith.mulf %5, %4 : vector<1x128xf32>
      %27 = arith.select %25, %4, %26 : vector<1x128xi1>, vector<1x128xf32>
      %c0_17 = arith.constant 0 : index
      %c0_18 = arith.constant 0 : index
      %28 = vector.load %arg9[%c0_17, %c0_18] : memref<1x128xf32, #tpu.memory_space<vmem>>, vector<1x128xf32>
      %cst_19 = arith.constant 3.200000e+01 : f32
      %29 = vector.broadcast %cst_19 : f32 to vector<1x128xf32>
      %30 = arith.mulf %29, %27 : vector<1x128xf32>
      %31 = arith.subf %28, %30 : vector<1x128xf32>
      %cst_20 = arith.constant 3.906250e-03 : f32
      %32 = vector.broadcast %cst_20 : f32 to vector<1x128xf32>
      %33 = arith.mulf %31, %32 : vector<1x128xf32>
      %c0_21 = arith.constant 0 : index
      %c0_22 = arith.constant 0 : index
      %34 = vector.load %arg6[%c0_21, %c0_22] : memref<128x128xf32, #tpu.memory_space<vmem>>, vector<128x128xf32>
      %cst_23 = arith.constant dense<0.000000e+00> : vector<1x128xf32>
      %35 = tpu.matmul %33, %34, %cst_23 {dimension_numbers = #tpu.dot_dimension_numbers<[1], [0], [0], [1], [0, 0, 1, 1], [], []>} : vector<1x128xf32>, vector<128x128xf32>, vector<1x128xf32> -> vector<1x128xf32>
      %c0_24 = arith.constant 0 : index
      %c0_25 = arith.constant 0 : index
      %36 = vector.load %arg7[%c0_24, %c0_25] : memref<1x128xf32, #tpu.memory_space<vmem>>, vector<1x128xf32>
      %37 = arith.addf %35, %36 : vector<1x128xf32>
      %38 = arith.mulf %37, %37 : vector<1x128xf32>
      %cst_26 = arith.constant dense<0.000000e+00> : vector<1xf32>
      %39 = vector.multi_reduction <add>, %38, %cst_26 [1] : vector<1x128xf32> to vector<1xf32>
      %40 = vector.shape_cast %39 : vector<1xf32> to vector<1x1xf32>
      %cst_27 = arith.constant 9.99999996E-13 : f32
      %41 = vector.broadcast %cst_27 : f32 to vector<1x1xf32>
      %42 = arith.addf %40, %41 : vector<1x1xf32>
      %43 = math.rsqrt %42 : vector<1x1xf32>
      %44 = vector.broadcast %43 : vector<1x1xf32> to vector<1x128xf32>
      %45 = arith.mulf %37, %44 : vector<1x128xf32>
      %c0_28 = arith.constant 0 : index
      %c0_29 = arith.constant 0 : index
      %c0_30 = arith.constant 0 : index
      %46 = vector.load %arg8[%c0_28, %c0_29, %c0_30] : memref<1x1x128xf32, #tpu.memory_space<vmem>>, vector<1x1x128xf32>
      %47 = vector.shape_cast %46 : vector<1x1x128xf32> to vector<1x128xf32>
      %48 = vector.shape_cast %45 : vector<1x128xf32> to vector<1x1x128xf32>
      tpu.vector_store %arg8[%c0_28, %c0_29, %c0_30], %48 {strides = array<i32>} : memref<1x1x128xf32, #tpu.memory_space<vmem>>, vector<1x1x128xf32>,
    } else {
    }
    return
  }
  func.func @transform_0(%arg0: i32, %arg1: i32) -> (i32, i32, i32) {
    %c0_i32 = arith.constant 0 : i32
    %c0_i32_0 = arith.constant 0 : i32
    return %arg0, %arg1, %c0_i32 : i32, i32, i32
  }
  func.func @transform_1(%arg0: i32, %arg1: i32) -> (i32, i32) {
    %c0_i32 = arith.constant 0 : i32
    %c0_i32_0 = arith.constant 0 : i32
    %c0_i32_1 = arith.constant 0 : i32
    return %c0_i32, %c0_i32_0 : i32, i32
  }
  func.func @transform_2(%arg0: i32, %arg1: i32) -> (i32, i32) {
    %c0_i32 = arith.constant 0 : i32
    %c0_i32_0 = arith.constant 0 : i32
    %c0_i32_1 = arith.constant 0 : i32
    return %c0_i32, %c0_i32_0 : i32, i32
  }
  func.func @transform_3(%arg0: i32, %arg1: i32) -> (i32, i32) {
    %c0_i32 = arith.constant 0 : i32
    %c0_i32_0 = arith.constant 0 : i32
    %c0_i32_1 = arith.constant 0 : i32
    return %c0_i32, %c0_i32_0 : i32, i32
  }
  func.func @transform_4(%arg0: i32, %arg1: i32) -> (i32, i32) {
    %c0_i32 = arith.constant 0 : i32
    %c0_i32_0 = arith.constant 0 : i32
    %c0_i32_1 = arith.constant 0 : i32
    return %c0_i32, %c0_i32_0 : i32, i32
  }
  func.func @transform_5(%arg0: i32, %arg1: i32) -> (i32, i32) {
    %c0_i32 = arith.constant 0 : i32
    %c0_i32_0 = arith.constant 0 : i32
    %c0_i32_1 = arith.constant 0 : i32
    return %c0_i32, %c0_i32_0 : i32, i32
  }
  func.func @transform_6(%arg0: i32, %arg1: i32) -> (i32, i32, i32) {
    %c0_i32 = arith.constant 0 : i32
    %c0_i32_0 = arith.constant 0 : i32
    %c0_i32_1 = arith.constant 0 : i32
    return %arg0, %c0_i32, %c0_i32_0 : i32, i32, i32
  }
}

</mosaic_0001>

<bundles_post_ra>
// kernel: _lambda_.1
= control target key start
LH: loop header
LB: loop body
LE: loop exit
PB: predicated region body
PF: predicated region fallthrough
CT: control target
= control target key end

     0   :  { %11 = vsyncpa [#allocation4], 0  ;;  %s1192_s0 = inlined_call_operand.vmem [shape: bf16[2,288,128], index: 0, kind: input, shape index: {}]   ;;  %s1193_s1 = inlined_call_operand.vmem [shape: bf16[128,128], index: 1, kind: input, shape index: {}]   ;;  %s1194_s2 = inlined_call_operand.vmem [shape: f32[1,128], index: 2, kind: input, shape index: {}]   ;;  %s1195_s3 = inlined_call_operand.vmem [shape: f32[1,128], index: 3, kind: input, shape index: {}]   ;;  %s1196_s4 = inlined_call_operand.vmem [shape: f32[128,128], index: 4, kind: input, shape index: {}]   ;;  %s1197_s5 = inlined_call_operand.vmem [shape: f32[1,128], index: 5, kind: input, shape index: {}]   ;;  %s1198_s6 = inlined_call_operand.hbm [shape: f32[2,1,128], index: 6, kind: output, shape index: {}]  }
   0x1   :  { %13 = vsyncpa [#allocation4 + $0x1], 0  ;;  %s961_s21 = smov 0   ;;  %s963_s22 = smov 0  }
   0x2   :  { %s965_s23 = smov 0   ;;  %s967_s24 = smov 0  }
   0x3   :  { %s969_s25 = smov 0   ;;  %s971_s26 = smov 0  }
   0x4   :  { %s973_s27 = smov 0   ;;  %s975_s28 = smov 0  }
   0x5 LB: > { %s648_s29 = sadd.s32 4294967295, %s923_s28   ;;  %s649_s30 = sadd.s32 4294967294, %s923_s28   ;;  %s923_s28 = sphi %s975_s28, %s19_s28   ;;  %s919_s27 = sphi %s973_s27, %s1210_s27   ;;  %s915_s26 = sphi %s971_s26, %s1209_s26   ;;  %s911_s25 = sphi %s969_s25, %s1208_s25   ;;  %s907_s24 = sphi %s967_s24, %s1207_s24   ;;  %s903_s23 = sphi %s965_s23, %s1206_s23   ;;  %s899_s22 = sphi %s963_s22, %s1205_s22   ;;  %s895_s21 = sphi %s961_s21, %s1204_s21  }
   0x6   : > { %s28_s7 = sadd.s32 1, %s915_s26  ;;  %s31_s8 = sadd.s32 1, %s919_s27 }
   0x7   : > { %p29_p0 = scmp.ge.s32.totalorder %s28_s7, 3  ;;  %p181_p1 = scmp.ne.s32.totalorder %s903_s23, %s899_s22 }
   0x8   : > { %p182_p2 = scmp.eq.s32.totalorder %s648_s29, 5  ;;  %p187_p4 = scmp.ne.s32.totalorder %s899_s22, %s895_s21 }
   0x9   : > { %s1212_s7 = smov (%p29_p0, %s28_s7), 0  ;;  %s1214_s8 = smov (!%p29_p0, %s31_s8), %s919_s27 }
   0xa   : > { %p1010_p3 = por %p182_p2, %p181_p1  ;;  %p33_p5 = scmp.ge.s32.totalorder %s1214_s8, 2 }
   0xb   : > { %p188_p6 = scmp.eq.s32.totalorder %s649_s30, 5  ;;  %p652_p7 = scmp.ge.s32.totalorder %s923_s28, 1 }
   0xc   : > { %p234_p8 = scmp.lt.s32.totalorder %s923_s28, 7  ;;  %s1216_s8 = smov (%p33_p5, %s1214_s8), 0 }
   0xd   : > { %1201 = sst [smem:[#allocation6_spill]] %s1216_s8  ;;  %p1020_p9 = por %p188_p6, %p187_p4 }
   0xe   : > { %p235_p10 = pnand %p652_p7, %p234_p8  ;;  %s168_s11 = ssub.s32 %s919_s27, %s1216_s8 }
   0xf   : > { %s171_s12 = sadd.s32 1, %s903_s23  ;;  %p169_p11 = scmp.eq.s32.totalorder %s168_s11, 0 }
  0x10   : > { %238 = sbr.rel (%p235_p10) target bundleno = 565 (0x235), region = 44  ;;  %s265_s14 = sand.u32 (!%p235_p10), 1, %s899_s22  }
  0x11   : > { %s1028_s13 = scalar_select %p169_p11, %s903_s23, %s171_s12  }
  0x12   : > { %s267_s15 = smul.u32 (!%p235_p10), 12, %s907_s24  ;;  %p268_p12 = scmp.lt.s32.totalorder (!%p235_p10), %s911_s25, 1 }
  0x13   : > { %s1041_s11 = scalar_lea.vmem (!%p235_p10), [#allocation3], %s265_s14  ;;  %p654_p0 = scmp.ne.s32.totalorder (!%p235_p10), %s907_s24, 0 }
  0x14   : > { %p270_p13 = scmp.lt.s32.totalorder (!%p235_p10), %s267_s15, 35 }
  0x15   : > { %s269_s16 = scalar_select %p268_p12, %s911_s25, 1 }
  0x16   : > { %s1218_s15 = smov (!%p270_p13, %s267_s15), 35 }
  0x17   : > { %s752_s17 = smul.u32 36, %s269_s16 }
  0x18   : > { %280 = sbr.rel (%p654_p0) target bundleno = 31 (0x1f), region = 48 }
  0x19   : > { %s273_s18 = sadd.s32 %s752_s17, %s1218_s15 }
  0x1a   : > { %s653_s19 = sshll.u32 %s273_s18, 2 }
  0x1b   : > { %s1037_s30 = scalar_lea.vmem %s1192_s0, %s653_s19 }
  0x1d   : > { %v925_v0 = vmov 0.0  }
  0x1e   : > { %281 = vst [vmem:[#allocation2] sm:$0x1] %v925_v0 }
  0x1f PF: > { %v721_v1 = vld [vmem:[%s1193_s1 + $0x38] sm:$0xff]  ;;  %v720_v2 = vld [vmem:[%s1193_s1 + $0x30] sm:$0xff]  ;;  %v719_v3 = vld [vmem:[%s1193_s1 + $0x28] sm:$0xff]  ;;  %p711_p1 = scmp.ne.s32.totalorder %s907_s24, 2 }
  0x20   : > { %399 = vmatpush.bf16.msra.mxu0 %v721_v1  ;;  %729 = vmatpush.bf16.msra.mxu2 %v721_v1  ;;  %v718_v4 = vld [vmem:[%s1193_s1 + $0x20] sm:$0xff]  ;;  %v717_v5 = vld [vmem:[%s1193_s1 + $0x18] sm:$0xff]  ;;  %v716_v6 = vld [vmem:[%s1193_s1 + $0x10] sm:$0xff] }
  0x21   : > { %730 = vmatpush.bf16.msra.mxu3 %v721_v1  ;;  %728 = vmatpush.bf16.msra.mxu1 %v721_v1  ;;  %v1065_v7 = vld [vmem:[%s1194_s2] sm:$0x1]  ;;  %v715_v9 = vld [vmem:[%s1193_s1 + $0x8] sm:$0xff]  ;;  %v724_v12 = vld [vmem:[%s1037_s30 + $0x10] sm:$0xff] }
  0x22   : > { %v1070_v8 = vld [vmem:[%s1195_s3] sm:$0x1]  ;;  %v723_v14 = vld [vmem:[%s1037_s30 + $0x8] sm:$0xff]  ;;  %v725_v15 = vld [vmem:[%s1037_s30 + $0x18] sm:$0xff] }
  0x23   : > { %v714_v10 = vld [vmem:[%s1193_s1] sm:$0xff]  ;;  %v727_v16 = vld [vmem:[%s1037_s30 + $0x28] sm:$0xff] }
  0x24   : > { %400 = vmatpush.bf16.msra.mxu0 %v720_v2  ;;  %732 = vmatpush.bf16.msra.mxu2 %v720_v2  ;;  %v722_v11 = vld [vmem:[%s1037_s30] sm:$0xff] }
  0x25   : > { %733 = vmatpush.bf16.msra.mxu3 %v720_v2  ;;  %731 = vmatpush.bf16.msra.mxu1 %v720_v2  ;;  %v726_v13 = vld [vmem:[%s1037_s30 + $0x20] sm:$0xff] }
  0x26   : > { %v825_v19 = vld [vmem:[%s1194_s2] ss:$0 sm:$0xff] }
  0x27   : > { %v826_v22 = vld [vmem:[%s1195_s3] ss:$0 sm:$0xff] }
  0x28   : > { %401 = vmatpush.bf16.msra.mxu0 %v719_v3  ;;  %735 = vmatpush.bf16.msra.mxu2 %v719_v3 }
  0x29   : > { %736 = vmatpush.bf16.msra.mxu3 %v719_v3  ;;  %734 = vmatpush.bf16.msra.mxu1 %v719_v3 }
  0x2c   : > { %402 = vmatpush.bf16.msra.mxu0 %v718_v4  ;;  %738 = vmatpush.bf16.msra.mxu2 %v718_v4 }
  0x2d   : > { %739 = vmatpush.bf16.msra.mxu3 %v718_v4  ;;  %737 = vmatpush.bf16.msra.mxu1 %v718_v4 }
  0x30   : > { %403 = vmatpush.bf16.msra.mxu0 %v717_v5  ;;  %741 = vmatpush.bf16.msra.mxu2 %v717_v5 }
  0x31   : > { %742 = vmatpush.bf16.msra.mxu3 %v717_v5  ;;  %740 = vmatpush.bf16.msra.mxu1 %v717_v5 }
  0x34   : > { %404 = vmatpush.bf16.msra.mxu0 %v716_v6  ;;  %744 = vmatpush.bf16.msra.mxu2 %v716_v6 }
  0x35   : > { %745 = vmatpush.bf16.msra.mxu3 %v716_v6  ;;  %743 = vmatpush.bf16.msra.mxu1 %v716_v6 }
  0x38   : > { %405 = vmatpush.bf16.msra.mxu0 %v715_v9  ;;  %747 = vmatpush.bf16.msra.mxu2 %v715_v9 }
  0x39   : > { %748 = vmatpush.bf16.msra.mxu3 %v715_v9  ;;  %746 = vmatpush.bf16.msra.mxu1 %v715_v9 }
  0x3c   : > { %406 = vmatpush.bf16.msra.mxu0 %v714_v10  ;;  %750 = vmatpush.bf16.msra.mxu2 %v714_v10 }
  0x3d   : > { %751 = vmatpush.bf16.msra.mxu3 %v714_v10  ;;  %749 = vmatpush.bf16.msra.mxu1 %v714_v10 }
  0x3f   : > { %407 = vmatmul.bf16.vlgmr.msra.gmra.mxu0 %v722_v11  ;;  %417 = vmatmul.bf16.vlgmr.msra.gmra.mxu2 %v724_v12 }
  0x40   : > { %427 = vmatmul.bf16.vlgmr.msra.gmra.mxu3 %v726_v13  ;;  %412 = vmatmul.bf16.vlgmr.msra.gmra.mxu1 %v723_v14 }
  0x4f   : > { %422 = vmatmul.bf16.gmra.mxu2 %v725_v15 }
  0x50   : > { %432 = vmatmul.bf16.gmra.mxu3 %v727_v16 }
  0xbc   : > { %v408_v17 = vpop.f32.mrf.mxu0 }
  0xbd   : > { %v413_v18 = vpop.f32.mrf.mxu1  ;;  %v409_v20 = vadd.f32 %v825_v19, %v408_v17 }
  0xbe   : > { %v414_v26 = vadd.f32 %v825_v19, %v413_v18 }
  0xbf   : > { %v453_v25 = vmul.f32 %v826_v22, %v409_v20  ;;  %vm438_vm0 = vcmp.ge.f32.partialorder %v409_v20, 0.0 }
  0xc0   : > { %v455_v31 = vmul.f32 %v826_v22, %v414_v26  ;;  %vm440_vm2 = vcmp.ge.f32.partialorder %v414_v26, 0.0 }
  0xc1   : > { %v465_v30 = vsel %vm438_vm0, %v409_v20, %v453_v25 }
  0xc2   : > { %v418_v21 = vpop.f32.mrf.mxu2  ;;  %v467_v37 = vsel %vm440_vm2, %v414_v26, %v455_v31 }
  0xc3   : > { %v428_v23 = vpop.f32.mrf.mxu3  ;;  %v419_v39 = vadd.f32 %v825_v19, %v418_v21 }
  0xc4   : > { %v410_v24 = vpop.f32.mrf.mxu0  ;;  %v429_v52 = vadd.f32 %v825_v19, %v428_v23 }
  0xc5   : > { %v411_v27 = vadd.f32 %v825_v19, %v410_v24  ;;  %v415_v28 = vpop.f32.mrf.mxu1  ;;  %v457_v43 = vmul.f32 %v826_v22, %v419_v39  ;;  %vm442_vm4 = vcmp.ge.f32.partialorder %v419_v39, 0.0 }
  0xc6   : > { %v416_v33 = vadd.f32 %v825_v19, %v415_v28  ;;  %v461_v60 = vmul.f32 %v826_v22, %v429_v52  ;;  %vm446_vm8 = vcmp.ge.f32.partialorder %v429_v52, 0.0 }
  0xc7   : > { %vm439_vm1 = vcmp.ge.f32.partialorder %v411_v27, 0.0  ;;  %v454_v29 = vmul.f32 %v826_v22, %v411_v27  ;;  %v469_v48 = vsel %vm442_vm4, %v419_v39, %v457_v43 }
  0xc8   : > { %v456_v38 = vmul.f32 %v826_v22, %v416_v33  ;;  %vm441_vm3 = vcmp.ge.f32.partialorder %v416_v33, 0.0  ;;  %v473_v4 = vsel %vm446_vm8, %v429_v52, %v461_v60 }
  0xc9   : > { %v466_v32 = vsel %vm439_vm1, %v411_v27, %v454_v29 }
  0xca   : > { %v420_v34 = vpop.f32.mrf.mxu2  ;;  %v477_v36 = vadd.f32 %v466_v32, %v465_v30  ;;  %v468_v41 = vsel %vm441_vm3, %v416_v33, %v456_v38 }
  0xcb   : > { %v430_v35 = vpop.f32.mrf.mxu3  ;;  %v421_v44 = vadd.f32 %v825_v19, %v420_v34 }
  0xcc   : > { %v478_v40 = vadd.f32 %v477_v36, %v467_v37  ;;  %v431_v55 = vadd.f32 %v825_v19, %v430_v35 }
  0xcd   : > { %v458_v49 = vmul.f32 %v826_v22, %v421_v44  ;;  %vm443_vm5 = vcmp.ge.f32.partialorder %v421_v44, 0.0 }
  0xce   : > { %v479_v47 = vadd.f32 %v478_v40, %v468_v41  ;;  %v462_v0 = vmul.f32 %v826_v22, %v431_v55  ;;  %vm447_vm9 = vcmp.ge.f32.partialorder %v431_v55, 0.0 }
  0xcf   : > { %v470_v54 = vsel %vm443_vm5, %v421_v44, %v458_v49 }
  0xd0   : > { %v480_v51 = vadd.f32 %v479_v47, %v469_v48  ;;  %v474_v9 = vsel %vm447_vm9, %v431_v55, %v462_v0 }
  0xd2   : > { %v423_v42 = vpop.f32.mrf.mxu2  ;;  %v481_v58 = vadd.f32 %v480_v51, %v470_v54 }
  0xd3   : > { %v424_v45 = vadd.f32 %v825_v19, %v423_v42  ;;  %v433_v46 = vpop.f32.mrf.mxu3 }
  0xd4   : > { %v434_v61 = vadd.f32 %v825_v19, %v433_v46 }
  0xd5   : > { %v459_v50 = vmul.f32 %v826_v22, %v424_v45  ;;  %vm444_vm6 = vcmp.ge.f32.partialorder %v424_v45, 0.0 }
  0xd6   : > { %v463_v5 = vmul.f32 %v826_v22, %v434_v61  ;;  %vm448_vm10 = vcmp.ge.f32.partialorder %v434_v61, 0.0 }
  0xd7   : > { %v471_v56 = vsel %vm444_vm6, %v424_v45, %v459_v50 }
  0xd8   : > { %v482_v63 = vadd.f32 %v481_v58, %v471_v56  ;;  %v475_v12 = vsel %vm448_vm10, %v434_v61, %v463_v5 }
  0xda   : > { %v425_v53 = vpop.f32.mrf.mxu2 }
  0xdb   : > { %v426_v57 = vadd.f32 %v825_v19, %v425_v53  ;;  %v435_v59 = vpop.f32.mrf.mxu3 }
  0xdc   : > { %v436_v2 = vadd.f32 %v825_v19, %v435_v59  ;;  %v494_v19 = vld [vmem:[#allocation2] sm:$0x1] }
  0xdd   : > { %vm445_vm7 = vcmp.ge.f32.partialorder %v426_v57, 0.0  ;;  %v460_v62 = vmul.f32 %v826_v22, %v426_v57 }
  0xde   : > { %v464_v10 = vmul.f32 %v826_v22, %v436_v2  ;;  %vm449_vm11 = vcmp.ge.f32.partialorder %v436_v2, 0.0 }
  0xdf   : > { %v472_v1 = vsel %vm445_vm7, %v426_v57, %v460_v62 }
  0xe0   : > { %v483_v3 = vadd.f32 %v482_v63, %v472_v1  ;;  %v476_v14 = vsel %vm449_vm11, %v436_v2, %v464_v10 }
  0xe2   : > { %v484_v6 = vadd.f32 %v483_v3, %v473_v4 }
  0xe4   : > { %v485_v11 = vadd.f32 %v484_v6, %v474_v9 }
  0xe6   : > { %v486_v13 = vadd.f32 %v485_v11, %v475_v12 }
  0xe8   : > { %v487_v15 = vadd.f32 %v486_v13, %v476_v14 }
  0xea   : > { %v488_v16 = vrot.slane %v487_v15, 4 }
  0xec   : > { %v489_v17 = vadd.f32 %v488_v16, %v487_v15 }
  0xee   : > { %v490_v18 = vrot.slane %v489_v17, 2 }
  0xf0   : > { %v491_v20 = vadd.f32 %v490_v18, %v489_v17 }
  0xf2   : > { %v492_v21 = vrot.slane %v491_v20, 1 }
  0xf4   : > { %v493_v23 = vadd.f32 %v492_v21, %v491_v20  ;;  %500 = sbr.rel (%p711_p1) target bundleno = 551 (0x227), region = 52 }
  0xf6   : > { %v495_v24 = vadd.f32 %v494_v19, %v493_v23 }
  0xf8   : > { %496 = vst [vmem:[#allocation2] sm:$0x1] %v495_v24 }
  0xf9   : > { %v523_v22 = vld [vmem:[%s1196_s4 + $0x78] sm:$0xff]  ;;  %v522_v25 = vld [vmem:[%s1196_s4 + $0x70] sm:$0xff]  ;;  %v521_v26 = vld [vmem:[%s1196_s4 + $0x68] sm:$0xff]  ;;  %v502_v32 = vmul.f32 %v1070_v8, %v1065_v7  ;;  %vm501_vm12 = vcmp.ge.f32.partialorder %v1065_v7, 0.0  ;;  %vm546_vm13 = vcmask 1040384  }
  0xfa   : > { %525 = vmatpush.msra.mxu0 %v523_v22  ;;  %v520_v27 = vld [vmem:[%s1196_s4 + $0x60] sm:$0xff]  ;;  %v519_v28 = vld [vmem:[%s1196_s4 + $0x58] sm:$0xff]  ;;  %v518_v29 = vld [vmem:[%s1196_s4 + $0x50] sm:$0xff] }
  0xfb   : > { %v517_v30 = vld [vmem:[%s1196_s4 + $0x48] sm:$0xff]  ;;  %v516_v31 = vld [vmem:[%s1196_s4 + $0x40] sm:$0xff]  ;;  %v515_v33 = vld [vmem:[%s1196_s4 + $0x38] sm:$0xff]  ;;  %v503_v35 = vsel %vm501_vm12, %v1065_v7, %v502_v32 }
  0xfc   : > { %526 = vmatpush.msra.mxu0 %v522_v25  ;;  %v514_v34 = vld [vmem:[%s1196_s4 + $0x30] sm:$0xff]  ;;  %v513_v36 = vld [vmem:[%s1196_s4 + $0x28] sm:$0xff]  ;;  %v512_v8 = vld [vmem:[%s1196_s4 + $0x20] sm:$0xff]  ;;  %v505_v37 = vmul.f32 32.0, %v503_v35 }
  0xfd   : > { %v511_v39 = vld [vmem:[%s1196_s4 + $0x18] sm:$0xff]  ;;  %v510_v7 = vld [vmem:[%s1196_s4 + $0x10] sm:$0xff]  ;;  %v509_v41 = vld [vmem:[%s1196_s4 + $0x8] sm:$0xff] }
  0xfe   : > { %527 = vmatpush.msra.mxu0 %v521_v26  ;;  %v508_v42 = vld [vmem:[%s1196_s4] sm:$0xff] }
  0xff   : > { %v504_v38 = vld [vmem:[#allocation2] sm:$0x1] }
 0x100   : > { %528 = vmatpush.msra.mxu0 %v520_v27  ;;  %v506_v40 = vsub.f32 %v504_v38, %v505_v37  ;;  %v524_v44 = vld [vmem:[%s1197_s5] sm:$0x1] }
 0x102   : > { %529 = vmatpush.msra.mxu0 %v519_v28  ;;  %v507_v43 = vmul.f32 0.00390625, %v506_v40 }
 0x104   : > { %530 = vmatpush.msra.mxu0 %v518_v29 }
 0x106   : > { %531 = vmatpush.msra.mxu0 %v517_v30 }
 0x108   : > { %532 = vmatpush.msra.mxu0 %v516_v31 }
 0x10a   : > { %533 = vmatpush.msra.mxu0 %v515_v33 }
 0x10c   : > { %534 = vmatpush.msra.mxu0 %v514_v34 }
 0x10e   : > { %535 = vmatpush.msra.mxu0 %v513_v36 }
 0x110   : > { %536 = vmatpush.msra.mxu0 %v512_v8 }
 0x112   : > { %537 = vmatpush.msra.mxu0 %v511_v39 }
 0x114   : > { %538 = vmatpush.msra.mxu0 %v510_v7 }
 0x116   : > { %539 = vmatpush.msra.mxu0 %v509_v41 }
 0x118   : > { %540 = vmatpush.msra.mxu0 %v508_v42 }
 0x119   : > { %541 = vmatmul.f32.vlgmr.msra.gmra.mxu0 %v507_v43 }
 0x196   : > { %v542_v45 = vpop.f32.mrf.mxu0 }
 0x197   : > { %v543_v46 = vadd.f32 %v542_v45, %v524_v44 }
 0x199   : > { %v545_v47 = vmul.f32 %v543_v46, %v543_v46 }
 0x19b   : > { %v547_v48 = vsel %vm546_vm13, %v545_v47, 0.0 }
 0x19c   : > { %548 = vadd.xlane.f32.xlu0 %v547_v48 }
 0x20f   : > { %v549_v49 = vpop.xlane.xlu0 %548 }
 0x210   : > { %v550_v50 = vadd.f32 1e-12, %v549_v49 }
 0x212   : > { %827 = vrsqrt.f32 %v550_v50  ;;  %vm557_vm15 = vweird.f32 %v550_v50 }
 0x218   : > { %v828_v51 = vpop.eup %827 }
 0x219   : > { %v552_v52 = vmul.f32 %v828_v51, %v550_v50  ;;  %vm558_vm14 = vweird.f32 %v828_v51 }
 0x21a   : > { %vm559_vm0 = vmor %vm557_vm15, %vm558_vm14 }
 0x21b   : > { %v553_v53 = vmul.f32 %v828_v51, %v552_v52 }
 0x21d   : > { %v554_v54 = vmul.f32 0.5, %v553_v53 }
 0x21f   : > { %v555_v55 = vsub.f32 1.5, %v554_v54 }
 0x221   : > { %v556_v56 = vmul.f32 %v828_v51, %v555_v55 }
 0x223   : > { %v560_v57 = vsel %vm559_vm0, %v828_v51, %v556_v56 }
 0x224   : > { %v561_v58 = vmul.f32 %v560_v57, %v543_v46 }
 0x226   : > { %562 = vst [vmem:[%s1041_s11] sm:$0x1] %v561_v58 }
 0x227 PF: > { %s572_s20 = scalar_lea.hbm %s1198_s6, %s911_s25  ;;  %s574_s29 = sshll.u32 %s1041_s11, 4  ;;  %s575_s29 = int_to_ptr.vmem [resolvable:$true] %s574_s29 }
 0x228   : > { %s576_s12 = sshll.u32 %s572_s20, 4  ;;  %s564_s15 = scalar_lea.sflag [#allocation4], %s265_s14  ;;  %s577_s12 = int_to_ptr.hbm [resolvable:$true] %s576_s12 }
 0x229   : > { %s843_s16 = sshra.s32 %s577_s12, 4  ;;  %s849_s30 = scalar_lea.hbm %s1198_s6, 2  ;;  %s844_s16 = int_to_ptr.hbm [resolvable:$true] %s843_s16 }
 0x22a   : > { %s845_s24 = scalar_lea.hbm %s844_s16, 1  ;;  %p850_p6 = scmp.lt.s32.totalorder %s844_s16, %s1198_s6 }
 0x22b   : > { %p846_p2 = scmp.ne.s32.totalorder %s844_s16, %s845_s24  ;;  %p851_p7 = scmp.lt.s32.totalorder %s849_s30, %s845_s24 }
 0x22d   : > { %p847_p4 = pnand %p846_p2, %p1010_p3  ;;  %p852_p8 = por %p851_p7, %p850_p6 }
 0x22f   : > { %p848_p5 = pneg %p847_p4 }
 0x231   : > { %p853_p10 = pnand %p852_p8, %p848_p5 }
 0x233   : > { %856 = shalt.err (!%p853_p10)
}
 0x234   : > { %753 = dma.vmem_to_hbm [thread:$0]  (%p1010_p3), %s575_s29, 16, %s577_s12, %s564_s15  }
 0x235 PF: > { %p759_p11 = scmp.ge.s32.totalorder %s923_s28, 2  ;;  %s588_s25 = sand.u32 1, %s895_s21  }
 0x236   : > { %s589_s14 = scalar_lea.sflag [#allocation4], %s588_s25 }
 0x237   : > { %p756_p12 = pnand %p759_p11, %p1020_p9 }
 0x239   : > { %p757_p13 = pneg %p756_p12 }
 0x23b   : > { %890 = dma.done.wait (%p757_p13), %s589_s14, 16  }
 0x23c   : > { %892 = vsyncadd (%p757_p13), %s589_s14, 4294967280  ;;  %s19_s28 = sadd.s32 1, %s923_s28   ;;  %s1203_s9 = sld [smem:[#allocation6_spill]] }
 0x23d   : > { %p16_p0 = scmp.ge.s32.totalorder %s19_s28, 8   ;;  %s1204_s21 = smov %s899_s22 }
 0x23e   : > { %s1205_s22 = smov %s903_s23  ;;  %s1206_s23 = smov %s1028_s13 }
 0x23f   : > { %s1207_s24 = smov %s915_s26  ;;  %s1208_s25 = smov %s919_s27 }
 0x240   : > { %s1209_s26 = smov %s1212_s7  ;;  %18 = sbr.rel (!%p16_p0) target bundleno = 5 (0x5), region = 87 }
 0x242   : > { %s1210_s27 = smov %s1203_s9 }
 0x245   :  { %594 = vsyncpa [#allocation4], 1 }
 0x246   :  { %596 = vsyncpa [#allocation4 + $0x1], 1 }

</bundles_post_ra>
